<compile_context>
chip_gen: v6e
topology: v6e:2x2x1
jax: 0.10.0
libtpu: 0.0.40
codegen_flags: <defaults>
</compile_context>

<pallas_src>
import functools

import jax
import jax.numpy as jnp
from jax import lax
from jax.experimental import pallas as pl
from jax.experimental.pallas import tpu as pltpu


def _rmsnorm_kernel(x_ref, w_ref, o_ref, *, eps: float, inv_h: float):
    # Whole [tm, H] tile; accumulate in float32 exactly as the reference does.
    x = x_ref[...].astype(jnp.float32)
    # sum * (1/H) instead of mean's divide; reduction on the XLU, rsqrt on EUP.
    ms = jnp.sum(x * x, axis=-1, keepdims=True) * inv_h          # [tm, 1]
    x_normed = x * lax.rsqrt(ms + eps)                            # [tm, H] f32
    # PyTorch: weight (f32) * x_normed.to(x_dtype)  -> promotes back to f32.
    x_normed = x_normed.astype(x_ref.dtype)
    o_ref[...] = (w_ref[...].astype(jnp.float32)
                  * x_normed.astype(jnp.float32)).astype(o_ref.dtype)


def _sublane_multiple(dtype) -> int:
    """Sublane alignment of the second-to-last block dim (8 f32, 16 bf16, 32 i8)."""
    itemsize = jnp.dtype(dtype).itemsize
    return max(8, 32 // itemsize)


def _vmem_capacity_bytes() -> int:
    """Per-TensorCore VMEM capacity; conservative 64 MiB fallback (v7x floor)."""
    try:
        return int(pltpu.get_tpu_info().vmem_capacity_bytes)
    except Exception:
        return 64 << 20


def _is_v7x() -> bool:
    try:
        return "v7" in jax.devices()[0].device_kind.lower()
    except Exception:
        return False


def rmsnorm(x: jax.Array, weight: jax.Array, eps: float, *,
            block_budget_bytes: int | None = None,
            max_row_tile: int | None = None,
            output_in_input_dtype: bool = False):
    """RMSNorm over the last axis of `x` using a Pallas TPU kernel."""
    orig_shape = x.shape
    hidden = orig_shape[-1]
    assert weight.shape == (hidden,)

    rows = 1
    for d in orig_shape[:-1]:
        rows *= d
    x2d = x.reshape(rows, hidden)
    w2d = weight.reshape(1, hidden)

    # Output dtype follows torch promotion (weight f32 * xn(x.dtype) -> f32),
    # unless the caller opts into the bandwidth-saving input-dtype output.
    if output_in_input_dtype:
        out_dtype = x.dtype
    else:
        out_dtype = jnp.promote_types(weight.dtype, x.dtype)

    x_bytes = jnp.dtype(x.dtype).itemsize
    o_bytes = jnp.dtype(out_dtype).itemsize
    w_bytes = jnp.dtype(weight.dtype).itemsize
    row_align = max(_sublane_multiple(x.dtype), _sublane_multiple(out_dtype))

    # --- Generation-aware VMEM budgeting -------------------------------------
    vmem_cap = _vmem_capacity_bytes()
    big_vmem = vmem_cap >= (96 << 20)          # v5e / v6e: 128 MiB per TC
    if block_budget_bytes is None:
        block_budget_bytes = (48 << 20) if big_vmem else (18 << 20)
    if max_row_tile is None:
        max_row_tile = 2048 if big_vmem else 1024

    # Per-row VMEM footprint: double-buffered x and out blocks PLUS the
    # in-kernel f32 temporaries (x upcast + normalized product, ~8 B/elem).
    per_row_buffered = 2 * hidden * (x_bytes + o_bytes) + 8 * hidden
    tm = block_budget_bytes // per_row_buffered
    tm = max(row_align, (tm // row_align) * row_align)
    tm = min(tm, max_row_tile)

    # Never tile past the data we actually have (rounded to sublane alignment).
    rows_aligned = ((rows + row_align - 1) // row_align) * row_align
    tm = min(tm, rows_aligned)

    # No pad/slice: let Pallas mask the ragged last row-block.
    grid = (pl.cdiv(rows, tm),)

    # Explicit scoped-VMEM budget: blocks + f32 temporaries + weight + headroom,
    # kept well under this generation's per-TC VMEM capacity.
    vmem_need = tm * per_row_buffered + hidden * w_bytes
    vmem_limit = int(max(16 << 20, vmem_need + (4 << 20)))
    vmem_limit = int(min(vmem_limit, vmem_cap - (8 << 20)))

    # v7x: 2 TensorCores per chip -- request real cross-core sharding of the
    # row axis.  Other generations keep plain "parallel".
    if _is_v7x():
        dim_sems = (getattr(pltpu, "CORE_PARALLEL", "parallel"),)
    else:
        dim_sems = ("parallel",)

    # NOTE: for hidden < 128 (toy shapes like the test's H=32) stores are
    # lane-masked; acceptable here.  Production hidden sizes are multiples of
    # 128 and are lane-dense with this layout.
    out2d = pl.pallas_call(
        functools.partial(_rmsnorm_kernel, eps=float(eps), inv_h=1.0 / hidden),
        out_shape=jax.ShapeDtypeStruct((rows, hidden), out_dtype),
        grid_spec=pltpu.PrefetchScalarGridSpec(
            num_scalar_prefetch=0,
            grid=grid,
            in_specs=[
                pl.BlockSpec((tm, hidden), lambda i: (i, 0)),   # x tile
                pl.BlockSpec((1, hidden), lambda i: (0, 0)),    # weight (resident)
            ],
            out_specs=pl.BlockSpec((tm, hidden), lambda i: (i, 0)),
        ),
        compiler_params=pltpu.CompilerParams(
            dimension_semantics=dim_sems,
            vmem_limit_bytes=vmem_limit,
        ),
    )(x2d, w2d)

    return out2d.reshape(orig_shape[:-1] + (hidden,))


def _rmsnorm_ref(x, weight, eps):
    x32 = x.astype(jnp.float32)
    ms = jnp.mean(x32 * x32, axis=-1, keepdims=True)
    xn = (x32 * lax.rsqrt(ms + eps)).astype(x.dtype)
    return weight * xn.astype(jnp.promote_types(weight.dtype, x.dtype))


if __name__ == "__main__":
    key = jax.random.PRNGKey(0)
    eps = 1e-6

    # Small shapes consistent with the module: batch=2, seq=8, hidden=32.
    batch, seq, hidden = 2, 8, 32
    x = jax.random.normal(key, (batch, seq, hidden), dtype=jnp.float32)
    # Deterministic parameter init per the module's __init__: weight = ones(embed_dim).
    weight = jnp.ones((hidden,), dtype=jnp.float32)

    out = jax.block_until_ready(rmsnorm(x, weight, eps))
    ref = _rmsnorm_ref(x, weight, eps)
    assert out.shape == ref.shape, (out.shape, ref.shape)
    assert out.dtype == ref.dtype, (out.dtype, ref.dtype)
    assert jnp.allclose(out, ref, atol=1e-5, rtol=1e-5), "mismatch vs reference"

    # Ragged-rows case: rows=20 is not a multiple of the forced tm=8, so the
    # last row-block is partial and exercised via the pl.cdiv grid (no pad/slice).
    x2 = jax.random.normal(jax.random.PRNGKey(1), (4, 5, hidden), dtype=jnp.float32)
    out2 = jax.block_until_ready(rmsnorm(x2, weight, eps, max_row_tile=8))
    ref2 = _rmsnorm_ref(x2, weight, eps)
    assert jnp.allclose(out2, ref2, atol=1e-5, rtol=1e-5), "mismatch (ragged rows)"

    print("KERNEL_OK")
</pallas_src>

<mosaic_0001>
module attributes {stable_mosaic.version = 11 : i64} {
  func.func @_rmsnorm_kernel(%arg0: i32, %arg1: memref<16x32xf32, #tpu.memory_space<vmem>>, %arg2: memref<1x32xf32, #tpu.memory_space<vmem>>, %arg3: memref<16x32xf32, #tpu.memory_space<vmem>>) attributes {dimension_semantics = [#tpu.dimension_semantics<parallel>], iteration_bounds = array<i64: 1>, scalar_prefetch = 0 : i64, scratch_operands = 0 : i64, tpu.core_type = #tpu.core_type<tc>, window_params = [{transform_indices = @transform_0, window_bounds = array<i64: 16, 32>}, {pipeline_mode = #tpu.pipeline_mode<synchronous>, transform_indices = @transform_1, window_bounds = array<i64: 1, 32>}, {transform_indices = @transform_2, window_bounds = array<i64: 16, 32>}]} {
    %c0 = arith.constant 0 : index
    %c0_0 = arith.constant 0 : index
    %0 = vector.load %arg1[%c0, %c0_0] : memref<16x32xf32, #tpu.memory_space<vmem>>, vector<16x32xf32>
    %1 = arith.mulf %0, %0 : vector<16x32xf32>
    %cst = arith.constant dense<0.000000e+00> : vector<16xf32>
    %2 = vector.multi_reduction <add>, %1, %cst [1] : vector<16x32xf32> to vector<16xf32>
    %3 = vector.shape_cast %2 : vector<16xf32> to vector<16x1xf32>
    %cst_1 = arith.constant 3.125000e-02 : f32
    %4 = vector.broadcast %cst_1 : f32 to vector<16x1xf32>
    %5 = arith.mulf %3, %4 : vector<16x1xf32>
    %cst_2 = arith.constant 9.99999997E-7 : f32
    %6 = vector.broadcast %cst_2 : f32 to vector<16x1xf32>
    %7 = arith.addf %5, %6 : vector<16x1xf32>
    %8 = math.rsqrt %7 : vector<16x1xf32>
    %9 = vector.broadcast %8 : vector<16x1xf32> to vector<16x32xf32>
    %10 = arith.mulf %0, %9 : vector<16x32xf32>
    %c0_3 = arith.constant 0 : index
    %c0_4 = arith.constant 0 : index
    %11 = vector.load %arg2[%c0_3, %c0_4] : memref<1x32xf32, #tpu.memory_space<vmem>>, vector<1x32xf32>
    %12 = vector.broadcast %11 : vector<1x32xf32> to vector<16x32xf32>
    %13 = arith.mulf %12, %10 : vector<16x32xf32>
    %c0_5 = arith.constant 0 : index
    %c0_6 = arith.constant 0 : index
    %14 = vector.load %arg3[%c0_5, %c0_6] : memref<16x32xf32, #tpu.memory_space<vmem>>, vector<16x32xf32>
    tpu.vector_store %arg3[%c0_5, %c0_6], %13 {strides = array<i32>} : memref<16x32xf32, #tpu.memory_space<vmem>>, vector<16x32xf32>,
    return
  }
  func.func @transform_0(%arg0: i32) -> (i32, i32) {
    %c0_i32 = arith.constant 0 : i32
    %c0_i32_0 = arith.constant 0 : i32
    return %arg0, %c0_i32 : i32, i32
  }
  func.func @transform_1(%arg0: i32) -> (i32, i32) {
    %c0_i32 = arith.constant 0 : i32
    %c0_i32_0 = arith.constant 0 : i32
    %c0_i32_1 = arith.constant 0 : i32
    return %c0_i32, %c0_i32_0 : i32, i32
  }
  func.func @transform_2(%arg0: i32) -> (i32, i32) {
    %c0_i32 = arith.constant 0 : i32
    %c0_i32_0 = arith.constant 0 : i32
    return %arg0, %c0_i32 : i32, i32
  }
}

</mosaic_0001>

<bundles_post_ra>
// kernel: tpu_custom_call.1
= control target key start
LH: loop header
LB: loop body
LE: loop exit
PB: predicated region body
PF: predicated region fallthrough
CT: control target
= control target key end

     0   :  { %7 = vsyncpa [#allocation3], 0  ;;  %s164_s0 = inlined_call_operand.hbm [shape: f32[16,32], index: 0, kind: input, shape index: {}]   ;;  %s165_s1 = inlined_call_operand.vmem [shape: f32[1,32], index: 1, kind: input, shape index: {}]   ;;  %s166_s2 = inlined_call_operand.hbm [shape: f32[16,32], index: 2, kind: output, shape index: {}]  }
   0x1   :  { %8 = vsyncpa [#allocation4], 0  ;;  %s126_s9 = smov [#allocation2]  }
   0x2   :  { %s14_s10 = sshll.u32 %s126_s9, 4  ;;  %s15_s10 = int_to_ptr.vmem [resolvable:$true] %s14_s10 }
   0x3   :  { %s90_s11 = scalar_lea.vmem %s15_s10, 256  ;;  %p95_p1 = scmp.lt.s32.totalorder %s15_s10, %s15_s10 }
   0x4   :  { %p91_p0 = scmp.ne.s32.totalorder %s15_s10, %s90_s11  ;;  %p96_p2 = scmp.lt.s32.totalorder %s90_s11, %s90_s11 }
   0x6   :  { %p97_p3 = por %p96_p2, %p95_p1 }
   0x8   :  { %p98_p4 = pnand %p97_p3, %p91_p0 }
   0xa   :  { %101 = shalt.err (!%p98_p4)
}
   0xb   :  { %s127_s12 = smov 128   ;;  %s128_s13 = smov 8  }
   0xc   :  { %20 = dma.hbm_to_vmem [thread:$0]  %s164_s0, 256, %s15_s10, [#allocation3], %s127_s12, %s127_s12, %s128_s13  }
   0xd   :  { %122 = dma.done.wait [#allocation3], 256  }
   0xe   :  { %123 = vsyncadd [#allocation3], 4294967040  ;;  %v26_v0 = vld [vmem:[#allocation2] sm:$0xff]  ;;  %vm30_vm0 = vcmask 261120   ;;  %v27_v1 = vld [vmem:[#allocation2 + $0x8] sm:$0xff]  ;;  %s129_s17 = smov [#allocation5]  }
   0xf   :  { %v28_v2 = vmul.f32 %v26_v0, %v26_v0  ;;  %v29_v3 = vmul.f32 %v27_v1, %v27_v1  ;;  %v73_v13 = vld [vmem:[%s165_s1] ss:$0 sm:$0xff]  ;;  %s61_s18 = sshll.u32 %s129_s17, 4  ;;  %s62_s18 = int_to_ptr.vmem [resolvable:$true] %s61_s18 }
  0x10   :  { %s102_s19 = scalar_lea.vmem %s62_s18, 256  ;;  %p107_p6 = scmp.lt.s32.totalorder %s62_s18, %s62_s18 }
  0x11   :  { %v31_v4 = vsel %vm30_vm0, %v28_v2, 0.0  ;;  %v34_v5 = vsel %vm30_vm0, %v29_v3, 0.0  ;;  %p103_p5 = scmp.ne.s32.totalorder %s62_s18, %s102_s19  ;;  %p108_p7 = scmp.lt.s32.totalorder %s102_s19, %s102_s19 }
  0x12   :  { %32 = vadd.xlane.f32.xlu0 %v31_v4 }
  0x13   :  { %p109_p8 = por %p108_p7, %p107_p6 }
  0x15   :  { %p110_p9 = pnand %p109_p8, %p103_p5 }
  0x16   :  { %35 = vadd.xlane.f32.xlu0 %v34_v5 }
  0x9b   :  { %v33_v6 = vpop.xlane.xlu0 %32 }
  0x9c   :  { %v37_v7 = vmul.f32 0.03125, %v33_v6 }
  0x9e   :  { %v39_v8 = vadd.f32 1e-06, %v37_v7 }
  0x9f   :  { %v36_v9 = vpop.xlane.xlu0 %35 }
  0xa0   :  { %78 = vrsqrt.f32 %v39_v8  ;;  %v38_v10 = vmul.f32 0.03125, %v36_v9 }
  0xa2   :  { %v40_v11 = vadd.f32 1e-06, %v38_v10 }
  0xa4   :  { %80 = vrsqrt.f32 %v40_v11 }
  0xad   :  { %v79_v12 = vpop.eup %78 }
  0xae   :  { %v43_v14 = vmul.f32 %v79_v12, %v26_v0 }
  0xb0   :  { %v52_v15 = vmul.f32 %v73_v13, %v43_v14 }
  0xb1   :  { %v81_v16 = vpop.eup %80 }
  0xb2   :  { %v44_v17 = vmul.f32 %v81_v16, %v27_v1  ;;  %54 = vst.msk [vmem:[#allocation5] sm:$0xff] %vm30_vm0, %v52_v15 }
  0xb4   :  { %v53_v18 = vmul.f32 %v73_v13, %v44_v17 }
  0xb6   :  { %55 = vst.msk [vmem:[#allocation5 + $0x8] sm:$0xff] %vm30_vm0, %v53_v18 }
  0xb7   :  { %113 = shalt.err (!%p110_p9)
}
  0xb8   :  { %67 = dma.vmem_to_hbm [thread:$0]  %s62_s18, 256, %s166_s2, [#allocation4], %s127_s12, %s127_s12, %s128_s13  }
  0xb9   :  { %124 = dma.done.wait [#allocation4], 256  }
  0xba   :  { %125 = vsyncadd [#allocation4], 4294967040 }
  0xbb   :  { %71 = vsyncpa [#allocation3], 1 }
  0xbc   :  { %72 = vsyncpa [#allocation4], 1 }

</bundles_post_ra>
